<compile_context>
chip_gen: v7x
topology: tpu7x:2x2x1
jax: 0.10.0
libtpu: 0.0.40
codegen_flags: <defaults>
</compile_context>

<pallas_src>
import jax
import jax.numpy as jnp
from jax.experimental import pallas as pl
from jax.experimental.pallas import tpu as pltpu


# ------------------------------- helpers ------------------------------------

def _round_up(x, m):
    return (x + m - 1) // m * m


def _pick_tm(m):
    """Row-tile for the fused matmul kernel (multiple of 8, VMEM-cheap)."""
    if m >= 4096:
        return 2048
    if m >= 1024:
        return 1024
    if m <= 16:
        return m                      # full extent (tiny problem)
    return max(8, (m // 2) // 8 * 8)  # >=2 steps at small m (pipeline exercised)


def _pick_th(h):
    """Output-row tile for the upsample kernel (multiple of 8 or full)."""
    if h <= 8:
        return h
    if h >= 256:
        return 128
    return max(8, (h // 2) // 8 * 8)


def _pick_tw(w):
    """Output-col tile (sublane dim of the bf16 output block: mult of 16 or full)."""
    if w <= 128:
        return w
    return 128


# ----------------------------- Pallas kernels -------------------------------

def _fused_backbone_classifier_kernel(x_ref, w1_ref, b1_ref, w2_ref, b2_ref,
                                      o_ref):
    """rows (TM, Cin) bf16 -> ReLU(x@W1 + b1) @ W2p + b2p : (TM, 128) bf16."""
    x = x_ref[...]                                              # bf16 (TM, Cin)
    h = jnp.dot(x, w1_ref[...], preferred_element_type=jnp.float32)
    h = jnp.maximum(h + b1_ref[...], 0.0)                       # f32 bias+ReLU
    h = h.astype(jnp.bfloat16)                                  # bf16 MXU input
    o = (jnp.dot(h, w2_ref[...], preferred_element_type=jnp.float32)
         + b2_ref[...])                                         # f32 bias add
    o_ref[...] = o.astype(jnp.bfloat16)                         # bf16, lane-dense


def _bilinear_kernel(x_ref, mw_ref, mh_ref, o_ref, t_ref):
    """Separable bilinear resize, W pass hoisted into scratch.

    Grid = (batch, W-tiles, H-tiles); H-tiles innermost ("arbitrary").
    x_ref : (1, Hf, Wf, C) bf16   padded-class logits of one image (C = 128)
    mw_ref: (TW, Wf) f32          W-interp rows for this output W tile
    mh_ref: (TH, Hf) f32          H-interp rows for this output H tile
    o_ref : (1, TH, TW, C) bf16
    t_ref : (Hf, TW*C) bf16       scratch: W-resized band, carried over H tiles
    """
    hf, wf, c = x_ref.shape[1], x_ref.shape[2], x_ref.shape[3]
    tw = mw_ref.shape[0]
    th = mh_ref.shape[0]

    # W-resize once per (image, W-tile): runs only on the first H tile.
    @pl.when(pl.program_id(2) == 0)
    def _():
        x = x_ref[0]                                            # (Hf, Wf, C)
        xt = jnp.transpose(x, (1, 0, 2)).reshape(wf, hf * c)    # small input xpose
        mwt = mw_ref[...].astype(jnp.bfloat16)
        t = jnp.dot(mwt, xt, preferred_element_type=jnp.float32)   # (TW, Hf*C)
        t = jnp.transpose(t.reshape(tw, hf, c), (1, 0, 2))      # (Hf, TW, C)
        t_ref[...] = t.reshape(hf, tw * c).astype(jnp.bfloat16)

    # H-resize: one matmul directly yields the output tile -- no output xpose.
    mht = mh_ref[...].astype(jnp.bfloat16)
    o = jnp.dot(mht, t_ref[...], preferred_element_type=jnp.float32)  # (TH, TW*C)
    o_ref[0] = o.reshape(th, tw, c).astype(jnp.bfloat16)


# ------------------------------ call wrappers --------------------------------

def fused_backbone_classifier(rows_bf16, w1_bf16, b1_f32, w2p_bf16, b2p_f32):
    m, cin = rows_bf16.shape
    cfeat = w1_bf16.shape[1]
    ncp = w2p_bf16.shape[1]
    tm = _pick_tm(m)
    return pl.pallas_call(
        _fused_backbone_classifier_kernel,
        out_shape=jax.ShapeDtypeStruct((m, ncp), jnp.bfloat16),
        grid=(pl.cdiv(m, tm),),
        in_specs=[
            pl.BlockSpec((tm, cin), lambda i: (i, 0)),       # pixel rows (tiled)
            pl.BlockSpec((cin, cfeat), lambda i: (0, 0)),    # resident weights
            pl.BlockSpec((1, cfeat), lambda i: (0, 0)),
            pl.BlockSpec((cfeat, ncp), lambda i: (0, 0)),
            pl.BlockSpec((1, ncp), lambda i: (0, 0)),
        ],
        out_specs=pl.BlockSpec((tm, ncp), lambda i: (i, 0)),
        compiler_params=pltpu.CompilerParams(
            dimension_semantics=("parallel",),
            vmem_limit_bytes=48 * 1024 * 1024,
        ),
    )(rows_bf16, w1_bf16, b1_f32, w2p_bf16, b2p_f32)


def bilinear_upsample(logits_nhwc, mh, mw):
    """(N, Hf, Wf, C) bf16 -> (N, H, W, C) bf16 bilinear (align_corners=False)."""
    n, hf, wf, c = logits_nhwc.shape
    h_out, w_out = mh.shape[0], mw.shape[0]
    th = _pick_th(h_out)
    tw = _pick_tw(w_out)
    return pl.pallas_call(
        _bilinear_kernel,
        out_shape=jax.ShapeDtypeStruct((n, h_out, w_out, c), jnp.bfloat16),
        grid=(n, pl.cdiv(w_out, tw), pl.cdiv(h_out, th)),
        in_specs=[
            pl.BlockSpec((1, hf, wf, c), lambda b, j, i: (b, 0, 0, 0)),
            pl.BlockSpec((tw, wf), lambda b, j, i: (j, 0)),
            pl.BlockSpec((th, hf), lambda b, j, i: (i, 0)),
        ],
        out_specs=pl.BlockSpec((1, th, tw, c), lambda b, j, i: (b, i, j, 0)),
        scratch_shapes=[pltpu.VMEM((hf, tw * c), jnp.bfloat16)],
        compiler_params=pltpu.CompilerParams(
            dimension_semantics=("parallel", "parallel", "arbitrary"),
            vmem_limit_bytes=48 * 1024 * 1024,
        ),
    )(logits_nhwc, mw, mh)


def bilinear_matrix(out_size, in_size):
    """Row-interpolation matrix matching F.interpolate(align_corners=False)."""
    scale = in_size / out_size
    i = jnp.arange(out_size, dtype=jnp.float32)
    src = (i + 0.5) * scale - 0.5
    src = jnp.maximum(src, 0.0)                      # PyTorch clamps negatives
    i0 = jnp.floor(src).astype(jnp.int32)
    i1 = jnp.minimum(i0 + 1, in_size - 1)
    frac = src - i0.astype(jnp.float32)
    m = jnp.zeros((out_size, in_size), jnp.float32)
    rows = jnp.arange(out_size)
    m = m.at[rows, i0].add(1.0 - frac)
    m = m.at[rows, i1].add(frac)
    return m


def simple_segmentation_model(x, w1, b1, w2, b2):
    """Forward of _SimpleSegmentationModel (concrete backbone/classifier).

    x: (N, Cin, H, W) f32 NCHW  ->  (N, num_classes, H, W) f32 NCHW.
    """
    n, cin, h, w = x.shape
    cfeat = w1.shape[1]
    ncls = w2.shape[1]
    ncp = _round_up(ncls, 128)                       # lane-dense padded classes

    # Backbone stride-2 sampling + NCHW->rows + bf16 cast, as one fused jit'd
    # chain (single copy pass before the kernel).
    xs = x[:, :, ::2, ::2]
    hf, wf = xs.shape[2], xs.shape[3]
    rows = (jnp.transpose(xs, (0, 2, 3, 1))
            .reshape(n * hf * wf, cin)
            .astype(jnp.bfloat16))

    w1b = w1.astype(jnp.bfloat16)
    w2p = (jnp.zeros((cfeat, ncp), jnp.float32)
           .at[:, :ncls].set(w2).astype(jnp.bfloat16))
    b1f = b1.reshape(1, cfeat).astype(jnp.float32)
    b2p = jnp.zeros((1, ncp), jnp.float32).at[:, :ncls].set(b2.reshape(1, ncls))

    # Fused 1x1 conv backbone + ReLU + 1x1 conv classifier (M-tiled, bf16 MXU,
    # bf16 logits out -> halves the intermediate HBM round-trip).
    logits = fused_backbone_classifier(rows, w1b, b1f, w2p, b2p)  # (M, ncp) bf16
    logits = logits.reshape(n, hf, wf, ncp)                       # free reshape

    # F.interpolate(size=(H, W), mode='bilinear', align_corners=False).
    mh = bilinear_matrix(h, hf)                      # (H, Hf) f32
    mw = bilinear_matrix(w, wf)                      # (W, Wf) f32
    up = bilinear_upsample(logits, mh, mw)           # (N, H, W, ncp) bf16

    # Drop the class padding, back to NCHW f32 (one XLA pass).
    return jnp.transpose(up[..., :ncls], (0, 3, 1, 2)).astype(jnp.float32)


# ----------------------------------- main ------------------------------------

if __name__ == "__main__":
    N, Cin, H, W = 2, 4, 16, 16
    Cfeat, num_classes = 32, 21

    key = jax.random.PRNGKey(0)
    k1, k2, k3, k4, k5 = jax.random.split(key, 5)
    x = jax.random.normal(k1, (N, Cin, H, W), jnp.float32)
    w1 = 0.1 * jax.random.normal(k2, (Cin, Cfeat), jnp.float32)
    b1 = 0.1 * jax.random.normal(k3, (1, Cfeat), jnp.float32)
    w2 = 0.1 * jax.random.normal(k4, (Cfeat, num_classes), jnp.float32)
    b2 = 0.1 * jax.random.normal(k5, (1, num_classes), jnp.float32)

    fwd = jax.jit(simple_segmentation_model)
    out = jax.block_until_ready(fwd(x, w1, b1, w2, b2))
    assert out.shape == (N, num_classes, H, W), out.shape

    # Pure-f32 XLA reference. Kernels use bf16 operands/intermediates (f32 MXU
    # accumulation), so the comparison tolerance is relaxed accordingly.
    xs = x[:, :, ::2, ::2]
    hf, wf = xs.shape[2], xs.shape[3]
    rows = jnp.transpose(xs, (0, 2, 3, 1)).reshape(-1, Cin)
    href = jnp.maximum(rows @ w1 + b1, 0.0)
    lref = href @ w2 + b2
    lref = jnp.transpose(lref.reshape(N, hf, wf, num_classes), (0, 3, 1, 2))
    mh = bilinear_matrix(H, hf)
    mw = bilinear_matrix(W, wf)
    ref = jnp.einsum("oh,nchw,pw->ncop", mh, lref, mw)

    err = float(jnp.max(jnp.abs(out - ref)))
    assert err < 5e-2, err
    print("KERNEL_OK")
</pallas_src>

<mosaic_0001>
module attributes {stable_mosaic.version = 11 : i64} {
  func.func private @main(%arg0: i32) attributes {dimension_semantics = [#tpu.dimension_semantics<core_parallel>], iteration_bounds = array<i64: 2>, tpu.core_type = #tpu.core_type<sc_scalar_subcore>, window_params = []} {
    return
  }
}

module attributes {stable_mosaic.version = 11 : i64} {
  func.func private @main(%arg0: i32) attributes {dimension_semantics = [#tpu.dimension_semantics<core_parallel>], iteration_bounds = array<i64: 2>, tpu.core_type = #tpu.core_type<sc_scalar_subcore>, window_params = []} {
    return
  }
}

module attributes {stable_mosaic.version = 11 : i64} {
  func.func @_bilinear_kernel(%arg0: i32, %arg1: i32, %arg2: i32, %arg3: memref<1x8x8x128xbf16, #tpu.memory_space<vmem>>, %arg4: memref<16x8xf32, #tpu.memory_space<vmem>>, %arg5: memref<8x8xf32, #tpu.memory_space<vmem>>, %arg6: memref<1x8x16x128xbf16, #tpu.memory_space<vmem>>, %arg7: memref<8x2048xbf16, #tpu.memory_space<vmem>>) attributes {dimension_semantics = [#tpu.dimension_semantics<parallel>, #tpu.dimension_semantics<parallel>, #tpu.dimension_semantics<arbitrary>], iteration_bounds = array<i64: 2, 1, 2>, scalar_prefetch = 0 : i64, scratch_operands = 1 : i64, tpu.core_type = #tpu.core_type<tc>, window_params = [{transform_indices = @transform_0, window_bounds = array<i64: 1, 8, 8, 128>}, {transform_indices = @transform_1, window_bounds = array<i64: 16, 8>}, {transform_indices = @transform_2, window_bounds = array<i64: 8, 8>}, {transform_indices = @transform_3, window_bounds = array<i64: 1, 8, 16, 128>}]} {
    %c0_i32 = arith.constant 0 : i32
    %0 = arith.cmpi eq, %arg2, %c0_i32 : i32
    %1 = arith.extui %0 : i1 to i32
    %c0_i32_0 = arith.constant 0 : i32
    %2 = arith.cmpi ne, %1, %c0_i32_0 : i32
    scf.if %2 {
      %c0_8 = arith.constant 0 : index
      %c0_9 = arith.constant 0 : index
      %c0_10 = arith.constant 0 : index
      %c0_11 = arith.constant 0 : index
      %12 = vector.load %arg3[%c0_8, %c0_9, %c0_10, %c0_11] : memref<1x8x8x128xbf16, #tpu.memory_space<vmem>>, vector<1x8x8x128xbf16>
      %13 = vector.shape_cast %12 : vector<1x8x8x128xbf16> to vector<8x8x128xbf16>
      %14 = tpu.transpose %13, [1, 0, 2] : vector<8x8x128xbf16> -> vector<8x8x128xbf16>
      %15 = vector.shape_cast %14 : vector<8x8x128xbf16> to vector<8x1024xbf16>
      %c0_12 = arith.constant 0 : index
      %c0_13 = arith.constant 0 : index
      %16 = vector.load %arg4[%c0_12, %c0_13] : memref<16x8xf32, #tpu.memory_space<vmem>>, vector<16x8xf32>
      %17 = arith.truncf %16 : vector<16x8xf32> to vector<16x8xbf16>
      %cst_14 = arith.constant dense<0.000000e+00> : vector<16x1024xf32>
      %18 = tpu.matmul %17, %15, %cst_14 {dimension_numbers = #tpu.dot_dimension_numbers<[1], [0], [0], [1], [0, 0, 1, 1], [], []>} : vector<16x8xbf16>, vector<8x1024xbf16>, vector<16x1024xf32> -> vector<16x1024xf32>
      %19 = vector.shape_cast %18 : vector<16x1024xf32> to vector<16x8x128xf32>
      %20 = tpu.transpose %19, [1, 0, 2] : vector<16x8x128xf32> -> vector<8x16x128xf32>
      %21 = vector.shape_cast %20 : vector<8x16x128xf32> to vector<8x2048xf32>
      %22 = arith.truncf %21 : vector<8x2048xf32> to vector<8x2048xbf16>
      %c0_15 = arith.constant 0 : index
      %c0_16 = arith.constant 0 : index
      %23 = vector.load %arg7[%c0_15, %c0_16] : memref<8x2048xbf16, #tpu.memory_space<vmem>>, vector<8x2048xbf16>
      tpu.vector_store %arg7[%c0_15, %c0_16], %22 {strides = array<i32>} : memref<8x2048xbf16, #tpu.memory_space<vmem>>, vector<8x2048xbf16>,
    } else {
    }
    %c0 = arith.constant 0 : index
    %c0_1 = arith.constant 0 : index
    %3 = vector.load %arg5[%c0, %c0_1] : memref<8x8xf32, #tpu.memory_space<vmem>>, vector<8x8xf32>
    %4 = arith.truncf %3 : vector<8x8xf32> to vector<8x8xbf16>
    %c0_2 = arith.constant 0 : index
    %c0_3 = arith.constant 0 : index
    %5 = vector.load %arg7[%c0_2, %c0_3] : memref<8x2048xbf16, #tpu.memory_space<vmem>>, vector<8x2048xbf16>
    %cst = arith.constant dense<0.000000e+00> : vector<8x2048xf32>
    %6 = tpu.matmul %4, %5, %cst {dimension_numbers = #tpu.dot_dimension_numbers<[1], [0], [0], [1], [0, 0, 1, 1], [], []>} : vector<8x8xbf16>, vector<8x2048xbf16>, vector<8x2048xf32> -> vector<8x2048xf32>
    %7 = vector.shape_cast %6 : vector<8x2048xf32> to vector<8x16x128xf32>
    %8 = arith.truncf %7 : vector<8x16x128xf32> to vector<8x16x128xbf16>
    %c0_4 = arith.constant 0 : index
    %c0_5 = arith.constant 0 : index
    %c0_6 = arith.constant 0 : index
    %c0_7 = arith.constant 0 : index
    %9 = vector.load %arg6[%c0_4, %c0_5, %c0_6, %c0_7] : memref<1x8x16x128xbf16, #tpu.memory_space<vmem>>, vector<1x8x16x128xbf16>
    %10 = vector.shape_cast %9 : vector<1x8x16x128xbf16> to vector<8x16x128xbf16>
    %11 = vector.shape_cast %8 : vector<8x16x128xbf16> to vector<1x8x16x128xbf16>
    tpu.vector_store %arg6[%c0_4, %c0_5, %c0_6, %c0_7], %11 {strides = array<i32>} : memref<1x8x16x128xbf16, #tpu.memory_space<vmem>>, vector<1x8x16x128xbf16>,
    return
  }
  func.func @transform_0(%arg0: i32, %arg1: i32, %arg2: i32) -> (i32, i32, i32, i32) {
    %c0_i32 = arith.constant 0 : i32
    %c0_i32_0 = arith.constant 0 : i32
    %c0_i32_1 = arith.constant 0 : i32
    %c0_i32_2 = arith.constant 0 : i32
    return %arg0, %c0_i32, %c0_i32_0, %c0_i32_1 : i32, i32, i32, i32
  }
  func.func @transform_1(%arg0: i32, %arg1: i32, %arg2: i32) -> (i32, i32) {
    %c0_i32 = arith.constant 0 : i32
    %c0_i32_0 = arith.constant 0 : i32
    return %arg1, %c0_i32 : i32, i32
  }
  func.func @transform_2(%arg0: i32, %arg1: i32, %arg2: i32) -> (i32, i32) {
    %c0_i32 = arith.constant 0 : i32
    %c0_i32_0 = arith.constant 0 : i32
    return %arg2, %c0_i32 : i32, i32
  }
  func.func @transform_3(%arg0: i32, %arg1: i32, %arg2: i32) -> (i32, i32, i32, i32) {
    %c0_i32 = arith.constant 0 : i32
    %c0_i32_0 = arith.constant 0 : i32
    return %arg0, %arg2, %arg1, %c0_i32 : i32, i32, i32, i32
  }
}

module attributes {stable_mosaic.version = 11 : i64} {
  func.func @_fused_backbone_classifier_kernel(%arg0: i32, %arg1: memref<64x4xbf16, #tpu.memory_space<vmem>>, %arg2: memref<4x32xbf16, #tpu.memory_space<vmem>>, %arg3: memref<1x32xf32, #tpu.memory_space<vmem>>, %arg4: memref<32x128xbf16, #tpu.memory_space<vmem>>, %arg5: memref<1x128xf32, #tpu.memory_space<vmem>>, %arg6: memref<64x128xbf16, #tpu.memory_space<vmem>>) attributes {dimension_semantics = [#tpu.dimension_semantics<parallel>], iteration_bounds = array<i64: 2>, scalar_prefetch = 0 : i64, scratch_operands = 0 : i64, tpu.core_type = #tpu.core_type<tc>, window_params = [{transform_indices = @transform_0, window_bounds = array<i64: 64, 4>}, {pipeline_mode = #tpu.pipeline_mode<synchronous>, transform_indices = @transform_1, window_bounds = array<i64: 4, 32>}, {pipeline_mode = #tpu.pipeline_mode<synchronous>, transform_indices = @transform_2, window_bounds = array<i64: 1, 32>}, {pipeline_mode = #tpu.pipeline_mode<synchronous>, transform_indices = @transform_3, window_bounds = array<i64: 32, 128>}, {pipeline_mode = #tpu.pipeline_mode<synchronous>, transform_indices = @transform_4, window_bounds = array<i64: 1, 128>}, {transform_indices = @transform_5, window_bounds = array<i64: 64, 128>}]} {
    %c0 = arith.constant 0 : index
    %c0_0 = arith.constant 0 : index
    %0 = vector.load %arg1[%c0, %c0_0] : memref<64x4xbf16, #tpu.memory_space<vmem>>, vector<64x4xbf16>
    %c0_1 = arith.constant 0 : index
    %c0_2 = arith.constant 0 : index
    %1 = vector.load %arg2[%c0_1, %c0_2] : memref<4x32xbf16, #tpu.memory_space<vmem>>, vector<4x32xbf16>
    %cst = arith.constant dense<0.000000e+00> : vector<64x32xf32>
    %2 = tpu.matmul %0, %1, %cst {dimension_numbers = #tpu.dot_dimension_numbers<[1], [0], [0], [1], [0, 0, 1, 1], [], []>} : vector<64x4xbf16>, vector<4x32xbf16>, vector<64x32xf32> -> vector<64x32xf32>
    %c0_3 = arith.constant 0 : index
    %c0_4 = arith.constant 0 : index
    %3 = vector.load %arg3[%c0_3, %c0_4] : memref<1x32xf32, #tpu.memory_space<vmem>>, vector<1x32xf32>
    %4 = vector.broadcast %3 : vector<1x32xf32> to vector<64x32xf32>
    %5 = arith.addf %2, %4 : vector<64x32xf32>
    %cst_5 = arith.constant 0.000000e+00 : f32
    %6 = vector.broadcast %cst_5 : f32 to vector<64x32xf32>
    %7 = arith.maximumf %5, %6 : vector<64x32xf32>
    %8 = arith.truncf %7 : vector<64x32xf32> to vector<64x32xbf16>
    %c0_6 = arith.constant 0 : index
    %c0_7 = arith.constant 0 : index
    %9 = vector.load %arg4[%c0_6, %c0_7] : memref<32x128xbf16, #tpu.memory_space<vmem>>, vector<32x128xbf16>
    %cst_8 = arith.constant dense<0.000000e+00> : vector<64x128xf32>
    %10 = tpu.matmul %8, %9, %cst_8 {dimension_numbers = #tpu.dot_dimension_numbers<[1], [0], [0], [1], [0, 0, 1, 1], [], []>} : vector<64x32xbf16>, vector<32x128xbf16>, vector<64x128xf32> -> vector<64x128xf32>
    %c0_9 = arith.constant 0 : index
    %c0_10 = arith.constant 0 : index
    %11 = vector.load %arg5[%c0_9, %c0_10] : memref<1x128xf32, #tpu.memory_space<vmem>>, vector<1x128xf32>
    %12 = vector.broadcast %11 : vector<1x128xf32> to vector<64x128xf32>
    %13 = arith.addf %10, %12 : vector<64x128xf32>
    %14 = arith.truncf %13 : vector<64x128xf32> to vector<64x128xbf16>
    %c0_11 = arith.constant 0 : index
    %c0_12 = arith.constant 0 : index
    %15 = vector.load %arg6[%c0_11, %c0_12] : memref<64x128xbf16, #tpu.memory_space<vmem>>, vector<64x128xbf16>
    tpu.vector_store %arg6[%c0_11, %c0_12], %14 {strides = array<i32>} : memref<64x128xbf16, #tpu.memory_space<vmem>>, vector<64x128xbf16>,
    return
  }
  func.func @transform_0(%arg0: i32) -> (i32, i32) {
    %c0_i32 = arith.constant 0 : i32
    %c0_i32_0 = arith.constant 0 : i32
    return %arg0, %c0_i32 : i32, i32
  }
  func.func @transform_1(%arg0: i32) -> (i32, i32) {
    %c0_i32 = arith.constant 0 : i32
    %c0_i32_0 = arith.constant 0 : i32
    %c0_i32_1 = arith.constant 0 : i32
    return %c0_i32, %c0_i32_0 : i32, i32
  }
  func.func @transform_2(%arg0: i32) -> (i32, i32) {
    %c0_i32 = arith.constant 0 : i32
    %c0_i32_0 = arith.constant 0 : i32
    %c0_i32_1 = arith.constant 0 : i32
    return %c0_i32, %c0_i32_0 : i32, i32
  }
  func.func @transform_3(%arg0: i32) -> (i32, i32) {
    %c0_i32 = arith.constant 0 : i32
    %c0_i32_0 = arith.constant 0 : i32
    %c0_i32_1 = arith.constant 0 : i32
    return %c0_i32, %c0_i32_0 : i32, i32
  }
  func.func @transform_4(%arg0: i32) -> (i32, i32) {
    %c0_i32 = arith.constant 0 : i32
    %c0_i32_0 = arith.constant 0 : i32
    %c0_i32_1 = arith.constant 0 : i32
    return %c0_i32, %c0_i32_0 : i32, i32
  }
  func.func @transform_5(%arg0: i32) -> (i32, i32) {
    %c0_i32 = arith.constant 0 : i32
    %c0_i32_0 = arith.constant 0 : i32
    return %arg0, %c0_i32 : i32, i32
  }
}

</mosaic_0001>

<bundles_post_ra>
// kernel: simple_segmentation_model.2
= control target key start
LH: loop header
LB: loop body
LE: loop exit
PB: predicated region body
PF: predicated region fallthrough
CT: control target
= control target key end

     0   :  { %s708_s18 = smov 0   ;;  %s751_s0 = inlined_call_operand.vmem [shape: bf16[128,4], index: 0, kind: input, shape index: {}]   ;;  %s752_s1 = inlined_call_operand.vmem [shape: bf16[4,32], index: 1, kind: input, shape index: {}]   ;;  %s753_s2 = inlined_call_operand.vmem [shape: f32[1,32], index: 2, kind: input, shape index: {}]   ;;  %s754_s3 = inlined_call_operand.vmem [shape: bf16[32,128], index: 3, kind: input, shape index: {}]   ;;  %s755_s4 = inlined_call_operand.vmem [shape: f32[1,128], index: 4, kind: input, shape index: {}]   ;;  %s756_s5 = inlined_call_operand.vmem [shape: bf16[128,128], index: 5, kind: output, shape index: {}]  }
   0x1 LB: > { %s556_s19 = sadd.s32 4294967295, %s676_s18   ;;  %p560_p0 = scmp.ge.s32.totalorder %s676_s18, 1  ;;  %s676_s18 = sphi %s708_s18, %s15_s18  }
   0x2   : > { %p188_p1 = scmp.lt.s32.totalorder %s676_s18, 3 }
   0x4   : > { %p189_p2 = pnand %p560_p0, %p188_p1 }
   0x5   : > { %v237_v0 = vld [vmem:[%s752_s1] sm:$0x3] (!%p189_p2)  ;;  %vm278_vm0 = vcmask (!%p189_p2), 1041408   ;;  %s561_s22 = sshll.u32 (!%p189_p2), %s556_s19, 3  ;;  %vm265_vm1 = vcmask (!%p189_p2), 31744   ;;  %v669_v7 = vld [vmem:[%s754_s3 + $0x8] sm:$0xff] (!%p189_p2)  }
   0x6   : > { %192 = sbr.rel (%p189_p2) target bundleno = 468 (0x1d4), region = 40  ;;  %655 = vmatprep.subr.msk.bf16.mxu0 (!%p189_p2), %vm278_vm0, %v237_v0  ;;  %v280_v1 = vsel (!%p189_p2), %vm278_vm0, %v237_v0, 0  ;;  %p217_p3 = scmp.lt.s32.totalorder (!%p189_p2), %s561_s22, 15  ;;  %v668_v6 = vld [vmem:[%s754_s3] sm:$0xff] (!%p189_p2)   ;;  %vm382_vm2 = vcmask (!%p189_p2), 261120  }
   0x7   : > { %634 = vmatpush3.bf16.msra.mxu0 (!%p189_p2), %v280_v1  ;;  %643 = vmatprep.subr.bf16.mxu1 (!%p189_p2), %v668_v6  ;;  %v565_v8 = vld [vmem:[%s753_s2] ss:$0 sm:$0xff] (!%p189_p2) }
   0x8   : > { %644 = vmatpush3.bf16.msra.mxu1 (!%p189_p2), %v668_v6  ;;  %v574_v38 = vld [vmem:[%s755_s4] ss:$0 sm:$0xff] (!%p189_p2) }
   0x9   : > { %645 = vmatprep.subr.bf16.mxu1 (!%p189_p2), %v669_v7 }
   0xc   : > { %646 = vmatpush3.bf16.msra.mxu1 (!%p189_p2), %v669_v7 }
   0xd   : > { %s758_s22 = smov (!%p217_p3, %s561_s22), 15 }
   0xe   : > { %s562_s23 = sshll.u32 %s758_s22, 2 }
   0xf   : > { %s220_s26 = scalar_lea.vmem %s751_s0, %s562_s23  ;;  %s226_s12 = scalar_lea.vmem %s756_s5, %s562_s23 }
  0x10   : > { %v664_v2 = vld [vmem:[%s220_s26] sm:$0xff]   ;;  %v665_v3 = vld [vmem:[%s220_s26 + $0x8] sm:$0xff]   ;;  %v666_v4 = vld [vmem:[%s220_s26 + $0x10] sm:$0xff]  }
  0x11   : > { %635 = vmatprep.mubr.msk.bf16.mxu0 %vm265_vm1, %v664_v2  ;;  %v667_v5 = vld [vmem:[%s220_s26 + $0x18] sm:$0xff]  }
  0x12   : > { %636 = vmatmul.mubr.msk.bf16.vlgmr.msra.gmra.mrb[0].mxu0 %vm265_vm1, %v665_v3 }
  0x13   : > { %639 = vmatprep.mubr.msk.bf16.mxu0 %vm265_vm1, %v666_v4 }
  0x1a   : > { %640 = vmatmul.mubr.msk.bf16.gmra.mrb[4].mxu0 %vm265_vm1, %v667_v5 }
  0xe5   : > { %v637_v9 = vpop.f32.mrb[0].mxu0 }
  0xe6   : > { %v325_v10 = vadd.f32 %v637_v9, %v565_v8  ;;  %v316_v11 = vpop.f32.mrb[1].mxu0 }
  0xe7   : > { %v317_v12 = vadd.f32 %v565_v8, %v316_v11  ;;  %v638_v13 = vpop.f32.mrb[2].mxu0 }
  0xe8   : > { %v328_v14 = vadd.f32 %v638_v13, %v565_v8  ;;  %v319_v15 = vpop.f32.mrb[3].mxu0  ;;  %v349_v17 = vmax.f32 %v325_v10, 0.0 }
  0xe9   : > { %v320_v16 = vadd.f32 %v565_v8, %v319_v15  ;;  %v347_v19 = vmax.f32 %v317_v12, 0.0 }
  0xea   : > { %v350_v18 = vmax.f32 %v328_v14, 0.0 }
  0xeb   : > { %v348_v20 = vmax.f32 %v320_v16, 0.0 }
  0xec   : > { %v356_v21 = vpack.c.bf16 %v350_v18, %v349_v17 }
  0xed   : > { %v641_v22 = vpop.f32.mrb[4].mxu0  ;;  %v355_v23 = vpack.c.bf16 %v348_v20, %v347_v19 }
  0xee   : > { %v341_v24 = vadd.f32 %v641_v22, %v565_v8  ;;  %v332_v25 = vpop.f32.mrb[5].mxu0 }
  0xef   : > { %v333_v26 = vadd.f32 %v565_v8, %v332_v25  ;;  %v642_v27 = vpop.f32.mrb[6].mxu0  ;;  %647 = vmatprep.mubr.msk.bf16.mxu1 %vm382_vm2, %v355_v23 }
  0xf0   : > { %v344_v28 = vadd.f32 %v642_v27, %v565_v8  ;;  %v335_v29 = vpop.f32.mrb[7].mxu0  ;;  %648 = vmatmul.mubr.msk.bf16.vlgmr.msra.gmra.mrb[0].mxu1 %vm382_vm2, %v356_v21  ;;  %v353_v31 = vmax.f32 %v341_v24, 0.0 }
  0xf1   : > { %v336_v30 = vadd.f32 %v565_v8, %v335_v29  ;;  %v351_v33 = vmax.f32 %v333_v26, 0.0 }
  0xf2   : > { %v354_v32 = vmax.f32 %v344_v28, 0.0 }
  0xf3   : > { %v352_v34 = vmax.f32 %v336_v30, 0.0 }
  0xf4   : > { %v358_v35 = vpack.c.bf16 %v354_v32, %v353_v31 }
  0xf5   : > { %v357_v36 = vpack.c.bf16 %v352_v34, %v351_v33 }
  0xf7   : > { %651 = vmatprep.mubr.msk.bf16.mxu1 %vm382_vm2, %v357_v36 }
  0xf8   : > { %652 = vmatmul.mubr.msk.bf16.gmra.mrb[4].mxu1 %vm382_vm2, %v358_v35 }
 0x1c3   : > { %v649_v37 = vpop.f32.mrb[0].mxu1 }
 0x1c4   : > { %v429_v39 = vpop.f32.mrb[1].mxu1  ;;  %v438_v41 = vadd.f32 %v649_v37, %v574_v38 }
 0x1c5   : > { %v650_v40 = vpop.f32.mrb[2].mxu1  ;;  %v430_v44 = vadd.f32 %v574_v38, %v429_v39 }
 0x1c6   : > { %v441_v42 = vadd.f32 %v650_v40, %v574_v38  ;;  %v432_v43 = vpop.f32.mrb[3].mxu1 }
 0x1c7   : > { %v433_v45 = vadd.f32 %v574_v38, %v432_v43 }
 0x1c8   : > { %v607_v46 = vpack.c.bf16 %v441_v42, %v438_v41 }
 0x1c9   : > { %v602_v47 = vpack.c.bf16 %v433_v45, %v430_v44 }
 0x1ca   : > { %619 = vst [vmem:[%s226_s12 + $0x8] sm:$0xff] %v607_v46  }
 0x1cb   : > { %603 = vst [vmem:[%s226_s12] sm:$0xff] %v602_v47   ;;  %v653_v48 = vpop.f32.mrb[4].mxu1 }
 0x1cc   : > { %v445_v49 = vpop.f32.mrb[5].mxu1  ;;  %v454_v51 = vadd.f32 %v653_v48, %v574_v38 }
 0x1cd   : > { %v654_v50 = vpop.f32.mrb[6].mxu1  ;;  %v446_v54 = vadd.f32 %v574_v38, %v445_v49 }
 0x1ce   : > { %v457_v52 = vadd.f32 %v654_v50, %v574_v38  ;;  %v448_v53 = vpop.f32.mrb[7].mxu1 }
 0x1cf   : > { %v449_v55 = vadd.f32 %v574_v38, %v448_v53 }
 0x1d0   : > { %v617_v56 = vpack.c.bf16 %v457_v52, %v454_v51 }
 0x1d1   : > { %v612_v57 = vpack.c.bf16 %v449_v55, %v446_v54 }
 0x1d2   : > { %621 = vst [vmem:[%s226_s12 + $0x18] sm:$0xff] %v617_v56  }
 0x1d3   : > { %620 = vst [vmem:[%s226_s12 + $0x10] sm:$0xff] %v612_v57  }
 0x1d4 PF: > { %s15_s18 = sadd.s32 1, %s676_s18  }
 0x1d5   : > { %p12_p4 = scmp.ge.s32.totalorder %s15_s18, 4  }
 0x1d7   :  { %14 = sbr.rel (!%p12_p4) target bundleno = 1 (0x1), region = 70 }

// kernel: simple_segmentation_model.3
= control target key start
LH: loop header
LB: loop body
LE: loop exit
PB: predicated region body
PF: predicated region fallthrough
CT: control target
= control target key end

     0   :  { %s2782_s12 = smov 0   ;;  %s2784_s13 = smov 0   ;;  %s3153_s0 = inlined_call_operand.vmem [shape: bf16[2,8,8,128], index: 0, kind: input, shape index: {}]   ;;  %s3154_s1 = inlined_call_operand.vmem [shape: f32[16,8], index: 1, kind: input, shape index: {}, may-alias: {1,2}]   ;;  %s3155_s2 = inlined_call_operand.vmem [shape: f32[16,8], index: 2, kind: input, shape index: {}, may-alias: {1,2}]   ;;  %s3156_s3 = inlined_call_operand.vmem [shape: bf16[2,16,16,128], index: 3, kind: output, shape index: {}]  }
   0x1   :  { %s2786_s14 = smov 0   ;;  %s2788_s15 = smov 0  }
   0x2   :  { %s2790_s16 = smov 0  }
   0x3 LB: > { %s25_s17 = sadd.s32 1, %s2746_s14  ;;  %s32_s18 = sadd.s32 1, %s2750_s15  ;;  %s2754_s16 = sphi %s2790_s16, %s13_s16   ;;  %s2750_s15 = sphi %s2788_s15, %s3160_s15   ;;  %s2746_s14 = sphi %s2786_s14, %s3159_s14   ;;  %s2742_s13 = sphi %s2784_s13, %s3158_s13   ;;  %s2738_s12 = sphi %s2782_s12, %s3157_s12  }
   0x4   : > { %p26_p0 = scmp.ge.s32.totalorder %s25_s17, 2  ;;  %p2471_p1 = scmp.ge.s32.totalorder %s2754_s16, 1 }
   0x5   : > { %p180_p2 = scmp.lt.s32.totalorder %s2754_s16, 5 }
   0x6   : > { %s3162_s17 = smov (%p26_p0, %s25_s17), 0  ;;  %s3164_s18 = smov (!%p26_p0, %s32_s18), %s2750_s15 }
   0x7   : > { %p181_p3 = pnand %p2471_p1, %p180_p2  ;;  %p34_p4 = scmp.ge.s32.totalorder %s3164_s18, 2 }
   0x8   : > { %p222_p5 = scmp.lt.s32.totalorder (!%p181_p3), %s2742_s13, 1  ;;  %p233_p6 = scmp.lt.s32.totalorder (!%p181_p3), %s2738_s12, 1 }
   0x9   : > { %s3166_s18 = smov (%p34_p4, %s3164_s18), 0  ;;  %184 = sbr.rel (%p181_p3) target bundleno = 589 (0x24d), region = 32 }
   0xa   : > { %s2475_s19 = sshll.u32 (!%p181_p3), %s2738_s12, 3  ;;  %p2479_p8 = scmp.ne.s32.totalorder (!%p181_p3), %s2738_s12, 0 }
   0xb   : > { %p241_p7 = scmp.lt.s32.totalorder (!%p181_p3), %s2475_s19, 15 }
  0x10   : > { %s3168_s13 = smov (!%p222_p5, %s2742_s13), 1  ;;  %s3170_s19 = smov (!%p241_p7, %s2475_s19), 15 }
  0x11   : > { %s234_s20 = scalar_select %p233_p6, %s2738_s12, 1 }
  0x12   : > { %s2578_s21 = sshll.u32 %s3168_s13, 5  ;;  %s2476_s29 = sshll.u32 %s3170_s19, 1  ;;  %v270_v0 = vlaneseq (!%p2479_p8)  ;;  %v2756_v1 = vmov (!%p2479_p8), 1983009808   ;;  %v2757_v4 = vmov (!%p2479_p8), 0   ;;  %vm465_vm0 = vcmask (!%p2479_p8), 1043456  }
  0x13   : > { %s226_s24 = scalar_lea.vmem %s3153_s0, %s2578_s21  ;;  %s2474_s25 = sshll.u32 %s234_s20, 3  ;;  %v268_v2 = vunpack.c.l.s4 (!%p2479_p8), %v2756_v1  ;;  %522 = vmatprep.mubr.bf16.mxu0 (!%p2479_p8), %v2757_v4  ;;  %565 = vmatprep.mubr.bf16.mxu1 (!%p2479_p8), %v2757_v4  ;;  %v2758_v6 = vmov (!%p2479_p8), 1934713408   ;;  %vm461_vm1 = vcmask (!%p2479_p8), 64512  }
  0x14   : > { %s2823_s28 = scalar_lea.vmem %s3155_s2, %s2474_s25  ;;  %s248_s30 = sadd.s32 %s2578_s21, %s2476_s29  ;;  %v271_v3 = vshrl.u32 (!%p2479_p8), %v270_v0, 7  ;;  %v2696_v5 = vld [vmem:[%s226_s24] ss:$16 sps:$4 sm:$0xff] (!%p2479_p8)   ;;  %v285_v7 = vunpack.c.l.s4 (!%p2479_p8), %v2758_v6  ;;  %v2697_v9 = vld [vmem:[%s226_s24 + $0x8] ss:$16 sps:$4 sm:$0xff] (!%p2479_p8)  }
  0x15   : > { %s2478_s4 = sshll.u32 %s248_s30, 2  ;;  %257 = sbr.rel (%p2479_p8) target bundleno = 329 (0x149), region = 36  ;;  %v269_v8 = vunpack.c.0.s8 (!%p2479_p8), %v268_v2  ;;  %v2698_v10 = vld [vmem:[%s226_s24 + $0x4] ss:$16 sps:$4 sm:$0xff] (!%p2479_p8)   ;;  %v2699_v11 = vld [vmem:[%s226_s24 + $0xc] ss:$16 sps:$4 sm:$0xff] (!%p2479_p8)  }
  0x16   : > { %s2828_s7 = scalar_lea.vmem %s3156_s3, %s2478_s4  ;;  %v286_v12 = vunpack.c.0.s8 (!%p2479_p8), %v285_v7 }
  0x17   : > { %v2833_v13 = vsub.s32 (!%p2479_p8), %v269_v8, %v271_v3 }
  0x18   : > { %v2835_v14 = vsub.s32 (!%p2479_p8), %v286_v12, %v271_v3 }
  0x19   : > { %v273_v15 = vrot.slane (!%p2479_p8), %v2696_v5, %v2833_v13  ;;  %v281_v16 = vrot.slane (!%p2479_p8), %v2697_v9, %v2833_v13  ;;  %v307_v17 = vrot.slane (!%p2479_p8), %v2698_v10, %v2833_v13  ;;  %v315_v18 = vrot.slane (!%p2479_p8), %v2699_v11, %v2833_v13  ;;  %v458_v9 = vld [vmem:[%s3154_s1] sm:$0xff] (!%p2479_p8)  ;;  %v459_v10 = vld [vmem:[%s3154_s1 + $0x8] sm:$0xff] (!%p2479_p8) }
  0x1b   : > { %v282_v19 = vcombine.low (!%p2479_p8), %v273_v15, %v281_v16  ;;  %v283_v20 = vcombine.high (!%p2479_p8), %v273_v15, %v281_v16  ;;  %v316_v21 = vcombine.low (!%p2479_p8), %v307_v17, %v315_v18  ;;  %v317_v22 = vcombine.high (!%p2479_p8), %v307_v17, %v315_v18 }
  0x1d   : > { %v290_v23 = vrot.slane %v282_v19, %v2835_v14  ;;  %v297_v24 = vrot.slane %v283_v20, %v2835_v14  ;;  %v324_v25 = vrot.slane %v316_v21, %v2835_v14  ;;  %v331_v26 = vrot.slane %v317_v22, %v2835_v14 }
  0x1f   : > { %v298_v27 = vcombine.high %v290_v23, %v2757_v4  ;;  %v299_v28 = vcombine.high %v297_v24, %v2757_v4  ;;  %v332_v29 = vcombine.high %v324_v25, %v2757_v4  ;;  %v333_v30 = vcombine.high %v331_v26, %v2757_v4 }
  0x20   : > { %v336_v31 = vpack.i.b16 %v324_v25, %v290_v23  ;;  %v338_v32 = vshrl.u32 %v290_v23, 16  ;;  %v339_v33 = vshrl.u32 %v324_v25, 16  ;;  %v352_v34 = vpack.i.b16 %v331_v26, %v297_v24 }
  0x21   : > { %v344_v35 = vpack.i.b16 %v332_v29, %v298_v27  ;;  %v346_v36 = vshrl.u32 %v298_v27, 16  ;;  %v347_v37 = vshrl.u32 %v332_v29, 16  ;;  %v354_v38 = vshrl.u32 %v297_v24, 16 }
  0x22   : > { %v340_v39 = vpack.i.b16 %v339_v33, %v338_v32  ;;  %v355_v40 = vshrl.u32 %v331_v26, 16  ;;  %v360_v41 = vpack.i.b16 %v333_v30, %v299_v28  ;;  %v362_v42 = vshrl.u32 %v299_v28, 16 }
  0x23   : > { %v348_v43 = vpack.i.b16 %v347_v37, %v346_v36  ;;  %v363_v44 = vshrl.u32 %v333_v30, 16  ;;  %v366_v45 = vcombine.low %v336_v31, %v352_v34  ;;  %v460_v24 = vpack.c.bf16 %v459_v10, %v458_v9 }
  0x24   : > { %v356_v46 = vpack.i.b16 %v355_v40, %v354_v38  ;;  %v374_v47 = vcombine.low %v344_v35, %v360_v41 }
  0x25   : > { %v364_v48 = vpack.i.b16 %v363_v44, %v362_v42  ;;  %v373_v49 = vrot.slane %v366_v45, %v2833_v13 }
  0x26   : > { %v381_v50 = vrot.slane %v374_v47, %v2833_v13  ;;  %v400_v51 = vcombine.low %v340_v39, %v356_v46 }
  0x27   : > { %v408_v52 = vcombine.low %v348_v43, %v364_v48 }
  0x28   : > { %v382_v53 = vcombine.low %v373_v49, %v381_v50  ;;  %v383_v54 = vcombine.high %v373_v49, %v381_v50  ;;  %v407_v55 = vrot.slane %v400_v51, %v2833_v13 }
  0x29   : > { %v415_v56 = vrot.slane %v408_v52, %v2833_v13 }
  0x2a   : > { %v390_v57 = vrot.slane %v382_v53, %v2835_v14  ;;  %v397_v58 = vrot.slane %v383_v54, %v2835_v14 }
  0x2b   : > { %v416_v59 = vcombine.low %v407_v55, %v415_v56  ;;  %v417_v60 = vcombine.high %v407_v55, %v415_v56 }
  0x2c   : > { %v398_v61 = vcombine.high %v390_v57, %v2757_v4  ;;  %v399_v62 = vcombine.high %v397_v58, %v2757_v4  ;;  %v437_v0 = vshrl.u32 %v390_v57, 16  ;;  %v449_v3 = vshrl.u32 %v397_v58, 16 }
  0x2d   : > { %v424_v63 = vrot.slane %v416_v59, %v2835_v14  ;;  %v431_v1 = vrot.slane %v417_v60, %v2835_v14 }
  0x2e   : > { %v443_v2 = vshrl.u32 %v398_v61, 16  ;;  %v455_v12 = vshrl.u32 %v399_v62, 16 }
  0x2f   : > { %v438_v5 = vshrl.u32 %v424_v63, 16  ;;  %v436_v6 = vpack.i.b16 %v424_v63, %v390_v57  ;;  %v432_v7 = vcombine.high %v424_v63, %v2757_v4  ;;  %v450_v8 = vshrl.u32 %v431_v1, 16 }
  0x30   : > { %v433_v11 = vcombine.high %v431_v1, %v2757_v4  ;;  %v448_v15 = vpack.i.b16 %v431_v1, %v397_v58 }
  0x31   : > { %v439_v16 = vpack.i.b16 %v438_v5, %v437_v0  ;;  %v467_v17 = vsel %vm465_vm0, %v436_v6, 0  ;;  %v444_v18 = vshrl.u32 %v432_v7, 16  ;;  %v442_v19 = vpack.i.b16 %v432_v7, %v398_v61 }
  0x32   : > { %v451_v20 = vpack.i.b16 %v450_v8, %v449_v3  ;;  %v456_v21 = vshrl.u32 %v433_v11, 16  ;;  %v454_v25 = vpack.i.b16 %v433_v11, %v399_v62  ;;  %v479_v27 = vsel %vm465_vm0, %v448_v15, 0 }
  0x33   : > { %2480 = vmatprep.subr.msk.bf16.mxu0 %vm465_vm0, %v439_v16  ;;  %v445_v22 = vpack.i.b16 %v444_v18, %v443_v2  ;;  %v473_v23 = vsel %vm465_vm0, %v442_v19, 0 }
  0x34   : > { %491 = vmatpush1.bf16.msra.mxu0 %v467_v17  ;;  %v457_v26 = vpack.i.b16 %v456_v21, %v455_v12  ;;  %v485_v28 = vsel %vm465_vm0, %v454_v25, 0 }
  0x35   : > { %2482 = vmatprep.subr.msk.bf16.mxu1 %vm465_vm0, %v445_v22  ;;  %2484 = vmatprep.subr.msk.bf16.mxu0 %vm465_vm0, %v451_v20 }
  0x36   : > { %534 = vmatpush1.bf16.msra.mxu1 %v473_v23 }
  0x37   : > { %2481 = vmatmul.mubr.msk.bf16.vlgmr.msra.gmra.mrb[0].mxu0 %vm461_vm1, %v460_v24  ;;  %2486 = vmatprep.subr.msk.bf16.mxu1 %vm465_vm0, %v457_v26 }
  0x38   : > { %577 = vmatpush1.bf16.msra.mxu0 %v479_v27  ;;  %608 = vmatprep.mubr.bf16.mxu0 %v2757_v4 }
  0x39   : > { %2483 = vmatmul.mubr.msk.bf16.vlgmr.msra.gmra.mrb[0].mxu1 %vm461_vm1, %v460_v24 }
  0x3a   : > { %620 = vmatpush1.bf16.msra.mxu1 %v485_v28  ;;  %651 = vmatprep.mubr.bf16.mxu1 %v2757_v4 }
  0x3f   : > { %2485 = vmatmul.mubr.msk.bf16.vlgmr.msra.gmra.mrb[4].mxu0 %vm461_vm1, %v460_v24 }
  0x41   : > { %2487 = vmatmul.mubr.msk.bf16.vlgmr.msra.gmra.mrb[4].mxu1 %vm461_vm1, %v460_v24 }
 0x10a   : > { %v524_v29 = vpop.f32.mrb[0].mxu0 }
 0x10b   : > { %v526_v30 = vpop.f32.mrb[1].mxu0 }
 0x10c   : > { %v528_v31 = vpop.f32.mrb[2].mxu0  ;;  %v567_v32 = vpop.f32.mrb[0].mxu1 }
 0x10d   : > { %v662_v33 = vcombine.low %v524_v29, %v567_v32  ;;  %v663_v34 = vcombine.high %v524_v29, %v567_v32  ;;  %v530_v35 = vpop.f32.mrb[3].mxu0  ;;  %v569_v36 = vpop.f32.mrb[1].mxu1 }
 0x10e   : > { %v678_v37 = vcombine.low %v526_v30, %v569_v36  ;;  %v679_v38 = vcombine.high %v526_v30, %v569_v36  ;;  %v571_v39 = vpop.f32.mrb[2].mxu1 }
 0x10f   : > { %v670_v40 = vrot.slane %v662_v33, %v2833_v13  ;;  %v677_v41 = vrot.slane %v663_v34, %v2833_v13  ;;  %v798_v42 = vcombine.low %v528_v31, %v571_v39  ;;  %v799_v43 = vcombine.high %v528_v31, %v571_v39  ;;  %v573_v4 = vpop.f32.mrb[3].mxu1 }
 0x110   : > { %v686_v44 = vrot.slane %v678_v37, %v2833_v13  ;;  %v693_v45 = vrot.slane %v679_v38, %v2833_v13  ;;  %v814_v46 = vcombine.low %v530_v35, %v573_v4  ;;  %v815_v47 = vcombine.high %v530_v35, %v573_v4 }
 0x111   : > { %v806_v48 = vrot.slane %v798_v42, %v2833_v13  ;;  %v813_v49 = vrot.slane %v799_v43, %v2833_v13 }
 0x112   : > { %v726_v50 = vcombine.low %v670_v40, %v686_v44  ;;  %v727_v51 = vcombine.high %v670_v40, %v686_v44  ;;  %v742_v52 = vcombine.low %v677_v41, %v693_v45  ;;  %v743_v53 = vcombine.high %v677_v41, %v693_v45  ;;  %v2883_v54 = vpop.f32.mrb[4].mxu0 }
 0x113   : > { %v822_v55 = vrot.slane %v814_v46, %v2833_v13  ;;  %v829_v56 = vrot.slane %v815_v47, %v2833_v13  ;;  %v2887_v57 = vpop.f32.mrb[5].mxu0 }
 0x114   : > { %v734_v58 = vrot.slane %v726_v50, %v2835_v14  ;;  %v741_v59 = vrot.slane %v727_v51, %v2835_v14  ;;  %v750_v60 = vrot.slane %v742_v52, %v2835_v14  ;;  %v757_v61 = vrot.slane %v743_v53, %v2835_v14  ;;  %v2893_v62 = vpop.f32.mrb[6].mxu0  ;;  %v2895_v63 = vpop.f32.mrb[4].mxu1 }
 0x115   : > { %v862_v0 = vcombine.low %v806_v48, %v822_v55  ;;  %v863_v1 = vcombine.high %v806_v48, %v822_v55  ;;  %v878_v2 = vcombine.low %v813_v49, %v829_v56  ;;  %v879_v3 = vcombine.high %v813_v49, %v829_v56  ;;  %v2897_v5 = vpop.f32.mrb[7].mxu0  ;;  %v2899_v6 = vpop.f32.mrb[5].mxu1 }
 0x116   : > { %v2488_v7 = vcombine.low %v734_v58, %v741_v59  ;;  %v2490_v8 = vcombine.high %v734_v58, %v741_v59  ;;  %v2492_v9 = vcombine.low %v750_v60, %v757_v61  ;;  %v2494_v10 = vcombine.high %v750_v60, %v757_v61  ;;  %v2901_v11 = vpop.f32.mrb[6].mxu1 }
 0x117   : > { %v870_v12 = vrot.slane %v862_v0, %v2835_v14  ;;  %v877_v15 = vrot.slane %v863_v1, %v2835_v14  ;;  %v886_v16 = vrot.slane %v878_v2, %v2835_v14  ;;  %v893_v17 = vrot.slane %v879_v3, %v2835_v14  ;;  %v2907_v18 = vpop.f32.mrb[7].mxu1 }
 0x118   : > { %v942_v19 = vrot.slane %v2488_v7, %v2833_v13  ;;  %v958_v20 = vrot.slane %v2490_v8, %v2833_v13  ;;  %v974_v21 = vrot.slane %v2492_v9, %v2833_v13  ;;  %v990_v22 = vrot.slane %v2494_v10, %v2833_v13 }
 0x119   : > { %v2496_v23 = vcombine.low %v870_v12, %v877_v15  ;;  %v2498_v24 = vcombine.high %v870_v12, %v877_v15  ;;  %v2500_v25 = vcombine.low %v886_v16, %v893_v17  ;;  %v2502_v26 = vcombine.high %v886_v16, %v893_v17 }
 0x11a   : > { %v998_v27 = vcombine.low %v942_v19, %v958_v20  ;;  %v999_v28 = vcombine.high %v942_v19, %v958_v20  ;;  %v1030_v29 = vcombine.low %v974_v21, %v990_v22  ;;  %v1031_v30 = vcombine.high %v974_v21, %v990_v22 }
 0x11b   : > { %v1078_v31 = vrot.slane %v2496_v23, %v2833_v13  ;;  %v1094_v32 = vrot.slane %v2498_v24, %v2833_v13  ;;  %v1110_v33 = vrot.slane %v2500_v25, %v2833_v13  ;;  %v1126_v34 = vrot.slane %v2502_v26, %v2833_v13 }
 0x11c   : > { %v1006_v35 = vrot.slane %v998_v27, %v2835_v14  ;;  %v1013_v36 = vrot.slane %v999_v28, %v2835_v14  ;;  %v1038_v37 = vrot.slane %v1030_v29, %v2835_v14  ;;  %v1045_v38 = vrot.slane %v1031_v30, %v2835_v14 }
 0x11d   : > { %v1134_v39 = vcombine.low %v1078_v31, %v1094_v32  ;;  %v1135_v40 = vcombine.high %v1078_v31, %v1094_v32  ;;  %v1166_v41 = vcombine.low %v1110_v33, %v1126_v34  ;;  %v1167_v42 = vcombine.high %v1110_v33, %v1126_v34 }
 0x11e   : > { %v2504_v43 = vcombine.low %v1006_v35, %v1013_v36  ;;  %v2505_v4 = vcombine.low %v1038_v37, %v1045_v38  ;;  %v2506_v44 = vcombine.high %v1006_v35, %v1013_v36  ;;  %v2507_v45 = vcombine.high %v1038_v37, %v1045_v38 }
 0x11f   : > { %v1142_v46 = vrot.slane %v1134_v39, %v2835_v14  ;;  %v1149_v47 = vrot.slane %v1135_v40, %v2835_v14  ;;  %v1174_v48 = vrot.slane %v1166_v41, %v2835_v14  ;;  %v1181_v49 = vrot.slane %v1167_v42, %v2835_v14 }
 0x120   : > { %v1214_v50 = vrot.slane %v2504_v43, %v2833_v13  ;;  %v1221_v51 = vrot.slane %v2505_v4, %v2833_v13  ;;  %v1230_v52 = vrot.slane %v2506_v44, %v2833_v13  ;;  %v1237_v53 = vrot.slane %v2507_v45, %v2833_v13 }
 0x121   : > { %v2512_v55 = vcombine.low %v1142_v46, %v1149_v47  ;;  %v2513_v56 = vcombine.low %v1174_v48, %v1181_v49  ;;  %v2514_v58 = vcombine.high %v1142_v46, %v1149_v47  ;;  %v2515_v59 = vcombine.high %v1174_v48, %v1181_v49 }
 0x122   : > { %v1270_v60 = vcombine.low %v1214_v50, %v1230_v52  ;;  %v1271_v61 = vcombine.high %v1214_v50, %v1230_v52  ;;  %v1286_v0 = vcombine.low %v1221_v51, %v1237_v53  ;;  %v1287_v1 = vcombine.high %v1221_v51, %v1237_v53 }
 0x123   : > { %v1350_v2 = vrot.slane %v2512_v55, %v2833_v13  ;;  %v1357_v3 = vrot.slane %v2513_v56, %v2833_v13  ;;  %v1366_v7 = vrot.slane %v2514_v58, %v2833_v13  ;;  %v1373_v8 = vrot.slane %v2515_v59, %v2833_v13 }
 0x124   : > { %v2934_v9 = vrot.slane %v1270_v60, %v2835_v14  ;;  %v2937_v10 = vrot.slane %v1271_v61, %v2835_v14  ;;  %v2940_v12 = vrot.slane %v1286_v0, %v2835_v14  ;;  %v2943_v15 = vrot.slane %v1287_v1, %v2835_v14 }
 0x125   : > { %v1406_v16 = vcombine.low %v1350_v2, %v1366_v7  ;;  %v1407_v17 = vcombine.high %v1350_v2, %v1366_v7  ;;  %v1422_v19 = vcombine.low %v1357_v3, %v1373_v8  ;;  %v1423_v20 = vcombine.high %v1357_v3, %v1373_v8 }
 0x126   : > { %v694_v21 = vcombine.low %v2883_v54, %v2895_v63  ;;  %v695_v22 = vcombine.high %v2883_v54, %v2895_v63  ;;  %v710_v23 = vcombine.low %v2887_v57, %v2899_v6  ;;  %v711_v24 = vcombine.high %v2887_v57, %v2899_v6 }
 0x127   : > { %v2954_v25 = vrot.slane %v1406_v16, %v2835_v14  ;;  %v2957_v26 = vrot.slane %v1407_v17, %v2835_v14  ;;  %v2960_v27 = vrot.slane %v1422_v19, %v2835_v14  ;;  %v2963_v28 = vrot.slane %v1423_v20, %v2835_v14 }
 0x128   : > { %v702_v54 = vrot.slane %v694_v21, %v2833_v13  ;;  %v709_v63 = vrot.slane %v695_v22, %v2833_v13  ;;  %v718_v29 = vrot.slane %v710_v23, %v2833_v13  ;;  %v725_v57 = vrot.slane %v711_v24, %v2833_v13 }
 0x129   : > { %v830_v6 = vcombine.low %v2893_v62, %v2901_v11  ;;  %v831_v30 = vcombine.high %v2893_v62, %v2901_v11  ;;  %v846_v31 = vcombine.low %v2897_v5, %v2907_v18  ;;  %v847_v32 = vcombine.high %v2897_v5, %v2907_v18 }
 0x12a   : > { %v758_v33 = vcombine.low %v702_v54, %v718_v29  ;;  %v759_v34 = vcombine.high %v702_v54, %v718_v29  ;;  %v774_v35 = vcombine.low %v709_v63, %v725_v57  ;;  %v775_v36 = vcombine.high %v709_v63, %v725_v57 }
 0x12b   : > { %v838_v37 = vrot.slane %v830_v6, %v2833_v13  ;;  %v845_v38 = vrot.slane %v831_v30, %v2833_v13  ;;  %v854_v39 = vrot.slane %v846_v31, %v2833_v13  ;;  %v861_v40 = vrot.slane %v847_v32, %v2833_v13 }
 0x12c   : > { %v766_v62 = vrot.slane %v758_v33, %v2835_v14  ;;  %v773_v11 = vrot.slane %v759_v34, %v2835_v14  ;;  %v782_v41 = vrot.slane %v774_v35, %v2835_v14  ;;  %v789_v5 = vrot.slane %v775_v36, %v2835_v14 }
 0x12d   : > { %v894_v18 = vcombine.low %v838_v37, %v854_v39  ;;  %v895_v42 = vcombine.high %v838_v37, %v854_v39  ;;  %v910_v43 = vcombine.low %v845_v38, %v861_v40  ;;  %v911_v4 = vcombine.high %v845_v38, %v861_v40 }
 0x12e   : > { %v2489_v44 = vcombine.low %v766_v62, %v773_v11  ;;  %v2491_v45 = vcombine.high %v766_v62, %v773_v11  ;;  %v2493_v46 = vcombine.low %v782_v41, %v789_v5  ;;  %v2495_v47 = vcombine.high %v782_v41, %v789_v5 }
 0x12f   : > { %v902_v48 = vrot.slane %v894_v18, %v2835_v14  ;;  %v909_v49 = vrot.slane %v895_v42, %v2835_v14  ;;  %v918_v50 = vrot.slane %v910_v43, %v2835_v14  ;;  %v925_v51 = vrot.slane %v911_v4, %v2835_v14 }
 0x130   : > { %v949_v52 = vrot.slane %v2489_v44, %v2833_v13  ;;  %v965_v53 = vrot.slane %v2491_v45, %v2833_v13  ;;  %v981_v55 = vrot.slane %v2493_v46, %v2833_v13  ;;  %v997_v56 = vrot.slane %v2495_v47, %v2833_v13 }
 0x131   : > { %v2497_v58 = vcombine.low %v902_v48, %v909_v49  ;;  %v2499_v59 = vcombine.high %v902_v48, %v909_v49  ;;  %v2501_v60 = vcombine.low %v918_v50, %v925_v51  ;;  %v2503_v61 = vcombine.high %v918_v50, %v925_v51 }
 0x132   : > { %v1014_v0 = vcombine.low %v949_v52, %v965_v53  ;;  %v1015_v1 = vcombine.high %v949_v52, %v965_v53  ;;  %v1046_v2 = vcombine.low %v981_v55, %v997_v56  ;;  %v1047_v3 = vcombine.high %v981_v55, %v997_v56 }
 0x133   : > { %v1085_v7 = vrot.slane %v2497_v58, %v2833_v13  ;;  %v1101_v8 = vrot.slane %v2499_v59, %v2833_v13  ;;  %v1117_v16 = vrot.slane %v2501_v60, %v2833_v13  ;;  %v1133_v17 = vrot.slane %v2503_v61, %v2833_v13 }
 0x134   : > { %v1022_v19 = vrot.slane %v1014_v0, %v2835_v14  ;;  %v1029_v20 = vrot.slane %v1015_v1, %v2835_v14  ;;  %v1054_v21 = vrot.slane %v1046_v2, %v2835_v14  ;;  %v1061_v22 = vrot.slane %v1047_v3, %v2835_v14 }
 0x135   : > { %v1150_v23 = vcombine.low %v1085_v7, %v1101_v8  ;;  %v1151_v24 = vcombine.high %v1085_v7, %v1101_v8  ;;  %v1182_v54 = vcombine.low %v1117_v16, %v1133_v17  ;;  %v1183_v63 = vcombine.high %v1117_v16, %v1133_v17 }
 0x136   : > { %v2508_v29 = vcombine.low %v1022_v19, %v1029_v20  ;;  %v2509_v57 = vcombine.low %v1054_v21, %v1061_v22  ;;  %v2510_v6 = vcombine.high %v1022_v19, %v1029_v20  ;;  %v2511_v30 = vcombine.high %v1054_v21, %v1061_v22 }
 0x137   : > { %v1158_v31 = vrot.slane %v1150_v23, %v2835_v14  ;;  %v1165_v32 = vrot.slane %v1151_v24, %v2835_v14  ;;  %v1190_v33 = vrot.slane %v1182_v54, %v2835_v14  ;;  %v1197_v34 = vrot.slane %v1183_v63, %v2835_v14 }
 0x138   : > { %v1246_v35 = vrot.slane %v2508_v29, %v2833_v13  ;;  %v1253_v36 = vrot.slane %v2509_v57, %v2833_v13  ;;  %v1262_v37 = vrot.slane %v2510_v6, %v2833_v13  ;;  %v1269_v38 = vrot.slane %v2511_v30, %v2833_v13 }
 0x139   : > { %v2516_v39 = vcombine.low %v1158_v31, %v1165_v32  ;;  %v2517_v40 = vcombine.low %v1190_v33, %v1197_v34  ;;  %v2518_v62 = vcombine.high %v1158_v31, %v1165_v32  ;;  %v2519_v11 = vcombine.high %v1190_v33, %v1197_v34 }
 0x13a   : > { %v1302_v41 = vcombine.low %v1246_v35, %v1262_v37  ;;  %v1303_v5 = vcombine.high %v1246_v35, %v1262_v37  ;;  %v1318_v18 = vcombine.low %v1253_v36, %v1269_v38  ;;  %v1319_v42 = vcombine.high %v1253_v36, %v1269_v38 }
 0x13b   : > { %v1382_v43 = vrot.slane %v2516_v39, %v2833_v13  ;;  %v1389_v4 = vrot.slane %v2517_v40, %v2833_v13  ;;  %v1398_v44 = vrot.slane %v2518_v62, %v2833_v13  ;;  %v1405_v45 = vrot.slane %v2519_v11, %v2833_v13 }
 0x13c   : > { %v1310_v46 = vrot.slane %v1302_v41, %v2835_v14  ;;  %v1317_v47 = vrot.slane %v1303_v5, %v2835_v14  ;;  %v1326_v48 = vrot.slane %v1318_v18, %v2835_v14  ;;  %v1333_v49 = vrot.slane %v1319_v42, %v2835_v14 }
 0x13d   : > { %v1438_v50 = vcombine.low %v1382_v43, %v1398_v44  ;;  %v1439_v51 = vcombine.high %v1382_v43, %v1398_v44  ;;  %v1454_v52 = vcombine.low %v1389_v4, %v1405_v45  ;;  %v1455_v53 = vcombine.high %v1389_v4, %v1405_v45 }
 0x13e   : > { %v1334_v55 = vcombine.low %v2934_v9, %v1310_v46  ;;  %v1335_v56 = vcombine.high %v2934_v9, %v1310_v46  ;;  %v1336_v58 = vcombine.low %v2937_v10, %v1317_v47  ;;  %v1337_v13 = vcombine.high %v2937_v10, %v1317_v47 }
 0x13f   : > { %v1338_v59 = vcombine.low %v2940_v12, %v1326_v48  ;;  %v1339_v60 = vcombine.high %v2940_v12, %v1326_v48  ;;  %v1340_v61 = vcombine.low %v2943_v15, %v1333_v49  ;;  %v1341_v0 = vcombine.high %v2943_v15, %v1333_v49 }
 0x140   : > { %v2579_v1 = vpack.c.bf16 %v1335_v56, %v1334_v55  ;;  %v2580_v2 = vpack.c.bf16 %v1337_v13, %v1336_v58  ;;  %v1446_v3 = vrot.slane %v1438_v50, %v2835_v14  ;;  %v1453_v7 = vrot.slane %v1439_v51, %v2835_v14 }
 0x141   : > { %v2581_v8 = vpack.c.bf16 %v1339_v60, %v1338_v59  ;;  %v2582_v9 = vpack.c.bf16 %v1341_v0, %v1340_v61  ;;  %v1462_v16 = vrot.slane %v1454_v52, %v2835_v14  ;;  %v1469_v10 = vrot.slane %v1455_v53, %v2835_v14 }
 0x142   : > { %1542 = vst [vmem:[#allocation2] sm:$0xff] %v2579_v1  ;;  %1543 = vst [vmem:[#allocation2 + $0x8] sm:$0xff] %v2580_v2  ;;  %v1470_v12 = vcombine.low %v2954_v25, %v1446_v3  ;;  %v1471_v17 = vcombine.high %v2954_v25, %v1446_v3  ;;  %v1472_v15 = vcombine.low %v2957_v26, %v1453_v7 }
 0x143   : > { %v1473_v19 = vcombine.high %v2957_v26, %v1453_v7  ;;  %1544 = vst [vmem:[#allocation2 + $0x10] sm:$0xff] %v2581_v8  ;;  %1545 = vst [vmem:[#allocation2 + $0x18] sm:$0xff] %v2582_v9  ;;  %v1474_v20 = vcombine.low %v2960_v27, %v1462_v16  ;;  %v1475_v21 = vcombine.high %v2960_v27, %v1462_v16 }
 0x144   : > { %v1476_v22 = vcombine.low %v2963_v28, %v1469_v10  ;;  %v1477_v14 = vcombine.high %v2963_v28, %v1469_v10  ;;  %v2583_v23 = vpack.c.bf16 %v1471_v17, %v1470_v12 }
 0x145   : > { %v2584_v24 = vpack.c.bf16 %v1473_v19, %v1472_v15  ;;  %v2585_v54 = vpack.c.bf16 %v1475_v21, %v1474_v20 }
 0x146   : > { %v2586_v63 = vpack.c.bf16 %v1477_v14, %v1476_v22  ;;  %1546 = vst [vmem:[#allocation2 + $0x20] sm:$0xff] %v2583_v23 }
 0x147   : > { %1547 = vst [vmem:[#allocation2 + $0x28] sm:$0xff] %v2584_v24  ;;  %1548 = vst [vmem:[#allocation2 + $0x30] sm:$0xff] %v2585_v54 }
 0x148   : > { %1549 = vst [vmem:[#allocation2 + $0x38] sm:$0xff] %v2586_v63 }
 0x149 PF: > { %v1552_v25 = vld [vmem:[#allocation2] sm:$0xff]  ;;  %vm1604_vm2 = vcmask 1043456   ;;  %v1553_v26 = vld [vmem:[#allocation2 + $0x8] sm:$0xff]  ;;  %v2759_v31 = vmov 0   ;;  %vm1600_vm3 = vcmask 64512   ;;  %v1986_v56 = vlaneseq }
 0x14a   : > { %v1550_v29 = vld [vmem:[%s2823_s28] sm:$0xff]  ;;  %v2529_v57 = vcombine.high %v1552_v25, %v1552_v25  ;;  %v2531_v27 = vcombine.high %v1553_v26, %v1553_v26  ;;  %v2528_v6 = vcombine.low %v1552_v25, %v1552_v25  ;;  %v2530_v30 = vcombine.low %v1553_v26, %v1553_v26  ;;  %1685 = vmatprep.mubr.bf16.mxu0 %v2759_v31  ;;  %v1554_v28 = vld [vmem:[#allocation2 + $0x10] sm:$0xff]  ;;  %v1555_v32 = vld [vmem:[#allocation2 + $0x18] sm:$0xff] }
 0x14b   : > { %1726 = vmatprep.mubr.bf16.mxu1 %v2759_v31  ;;  %v2533_v33 = vcombine.high %v1554_v28, %v1554_v28  ;;  %v2535_v34 = vcombine.high %v1555_v32, %v1555_v32  ;;  %v2532_v35 = vcombine.low %v1554_v28, %v1554_v28  ;;  %v1551_v38 = vpack.c.bf16 %v1550_v29, %v1550_v29 }
 0x14c   : > { %2544 = vmatprep.subr.msk.bf16.mxu0 %vm1604_vm2, %v2529_v57  ;;  %2546 = vmatprep.subr.msk.bf16.mxu1 %vm1604_vm2, %v2531_v27  ;;  %v1606_v36 = vsel %vm1604_vm2, %v2528_v6, 0  ;;  %v1612_v37 = vsel %vm1604_vm2, %v2530_v30, 0  ;;  %v2534_v39 = vcombine.low %v1555_v32, %v1555_v32  ;;  %v2760_v53 = vmov 1983009808  }
 0x14d   : > { %v1556_v40 = vld [vmem:[#allocation2 + $0x20] sm:$0xff]  ;;  %1654 = vmatpush1.bf16.msra.mxu0 %v1606_v36  ;;  %1695 = vmatpush1.bf16.msra.mxu1 %v1612_v37  ;;  %v1618_v11 = vsel %vm1604_vm2, %v2532_v35, 0  ;;  %v1984_v55 = vunpack.c.l.s4 %v2760_v53  ;;  %v1987_v13 = vshrl.u32 %v1986_v56, 7  ;;  %v2761_v17 = vmov 1934713408  }
 0x14e   : > { %v1557_v62 = vld [vmem:[#allocation2 + $0x28] sm:$0xff]  ;;  %2548 = vmatprep.subr.msk.bf16.mxu0 %vm1604_vm2, %v2533_v33  ;;  %2550 = vmatprep.subr.msk.bf16.mxu1 %vm1604_vm2, %v2535_v34  ;;  %v1624_v41 = vsel %vm1604_vm2, %v2534_v39, 0  ;;  %v2537_v5 = vcombine.high %v1556_v40, %v1556_v40  ;;  %v2536_v42 = vcombine.low %v1556_v40, %v1556_v40  ;;  %v1558_v4 = vld [vmem:[#allocation2 + $0x30] sm:$0xff]  ;;  %v2048_v15 = vunpack.c.l.s4 %v2761_v17 }
 0x14f   : > { %v2539_v18 = vcombine.high %v1557_v62, %v1557_v62  ;;  %v2538_v43 = vcombine.low %v1557_v62, %v1557_v62  ;;  %v1559_v44 = vld [vmem:[#allocation2 + $0x38] sm:$0xff]  ;;  %v2541_v47 = vcombine.high %v1558_v4, %v1558_v4  ;;  %v2540_v49 = vcombine.low %v1558_v4, %v1558_v4 }
 0x150   : > { %2545 = vmatmul.mubr.msk.bf16.vlgmr.msra.gmra.mrb[0].mxu0 %vm1600_vm3, %v1551_v38  ;;  %2547 = vmatmul.mubr.msk.bf16.vlgmr.msra.gmra.mrb[0].mxu1 %vm1600_vm3, %v1551_v38  ;;  %v1630_v45 = vsel %vm1604_vm2, %v2536_v42, 0  ;;  %v2543_v48 = vcombine.high %v1559_v44, %v1559_v44  ;;  %v2542_v50 = vcombine.low %v1559_v44, %v1559_v44  ;;  %v1985_v58 = vunpack.c.0.s8 %v1984_v55 }
 0x151   : > { %1736 = vmatpush1.bf16.msra.mxu0 %v1618_v11  ;;  %1777 = vmatpush1.bf16.msra.mxu1 %v1624_v41  ;;  %v1636_v46 = vsel %vm1604_vm2, %v2538_v43, 0  ;;  %v1642_v51 = vsel %vm1604_vm2, %v2540_v49, 0  ;;  %v2049_v63 = vunpack.c.0.s8 %v2048_v15 }
 0x152   : > { %1767 = vmatprep.mubr.bf16.mxu0 %v2759_v31  ;;  %1808 = vmatprep.mubr.bf16.mxu1 %v2759_v31  ;;  %v1648_v52 = vsel %vm1604_vm2, %v2542_v50, 0  ;;  %v3062_v59 = vsub.s32 %v1985_v58, %v1987_v13 }
 0x153   : > { %2552 = vmatprep.subr.msk.bf16.mxu0 %vm1604_vm2, %v2537_v5  ;;  %2554 = vmatprep.subr.msk.bf16.mxu1 %vm1604_vm2, %v2539_v18  ;;  %v3068_v33 = vsub.s32 %v2049_v63, %v1987_v13 }
 0x158   : > { %2549 = vmatmul.mubr.msk.bf16.vlgmr.msra.gmra.mrb[4].mxu0 %vm1600_vm3, %v1551_v38  ;;  %2551 = vmatmul.mubr.msk.bf16.vlgmr.msra.gmra.mrb[4].mxu1 %vm1600_vm3, %v1551_v38 }
 0x159   : > { %1818 = vmatpush1.bf16.msra.mxu0 %v1630_v45  ;;  %1859 = vmatpush1.bf16.msra.mxu1 %v1636_v46 }
 0x15a   : > { %1849 = vmatprep.mubr.bf16.mxu0 %v2759_v31  ;;  %1890 = vmatprep.mubr.bf16.mxu1 %v2759_v31 }
 0x15b   : > { %2556 = vmatprep.subr.msk.bf16.mxu0 %vm1604_vm2, %v2541_v47  ;;  %2558 = vmatprep.subr.msk.bf16.mxu1 %vm1604_vm2, %v2543_v48 }
 0x160   : > { %2553 = vmatmul.mubr.msk.bf16.vlgmr.msra.gmra.mrb[8].mxu0 %vm1600_vm3, %v1551_v38  ;;  %2555 = vmatmul.mubr.msk.bf16.vlgmr.msra.gmra.mrb[8].mxu1 %vm1600_vm3, %v1551_v38 }
 0x161   : > { %1900 = vmatpush1.bf16.msra.mxu0 %v1642_v51  ;;  %1941 = vmatpush1.bf16.msra.mxu1 %v1648_v52 }
 0x162   : > { %1931 = vmatprep.mubr.bf16.mxu0 %v2759_v31  ;;  %1972 = vmatprep.mubr.bf16.mxu1 %v2759_v31 }
 0x168   : > { %2557 = vmatmul.mubr.msk.bf16.vlgmr.msra.gmra.mrb[12].mxu0 %vm1600_vm3, %v1551_v38  ;;  %2559 = vmatmul.mubr.msk.bf16.vlgmr.msra.gmra.mrb[12].mxu1 %vm1600_vm3, %v1551_v38 }
 0x223   : > { %v1687_v60 = vpop.f32.mrb[0].mxu0  ;;  %v1728_v61 = vpop.f32.mrb[0].mxu1 }
 0x224   : > { %v1981_v0 = vcombine.low %v1687_v60, %v1728_v61  ;;  %v1982_v1 = vcombine.high %v1687_v60, %v1728_v61  ;;  %v1689_v2 = vpop.f32.mrb[1].mxu0  ;;  %v1730_v3 = vpop.f32.mrb[1].mxu1 }
 0x225   : > { %v1997_v7 = vcombine.low %v1689_v2, %v1730_v3  ;;  %v1998_v8 = vcombine.high %v1689_v2, %v1730_v3  ;;  %v1691_v9 = vpop.f32.mrb[2].mxu0  ;;  %v1732_v16 = vpop.f32.mrb[2].mxu1 }
 0x226   : > { %v1989_v10 = vrot.slane %v1981_v0, %v3062_v59  ;;  %v1996_v12 = vrot.slane %v1982_v1, %v3062_v59  ;;  %v1692_v19 = vpop.f32.mrb[3].mxu0  ;;  %v1733_v20 = vpop.f32.mrb[3].mxu1 }
 0x227   : > { %v2005_v21 = vrot.slane %v1997_v7, %v3062_v59  ;;  %v2012_v22 = vrot.slane %v1998_v8, %v3062_v59 }
 0x229   : > { %v2045_v14 = vcombine.low %v1989_v10, %v2005_v21  ;;  %v2046_v23 = vcombine.high %v1989_v10, %v2005_v21  ;;  %v2061_v24 = vcombine.low %v1996_v12, %v2012_v22  ;;  %v2062_v54 = vcombine.high %v1996_v12, %v2012_v22 }
 0x22b   : > { %v1769_v25 = vpop.f32.mrb[4].mxu0  ;;  %v1810_v26 = vpop.f32.mrb[4].mxu1  ;;  %v3075_v5 = vrot.slane %v2045_v14, %v3068_v33  ;;  %v3078_v18 = vrot.slane %v2046_v23, %v3068_v33  ;;  %v3093_v47 = vrot.slane %v2061_v24, %v3068_v33  ;;  %v3096_v48 = vrot.slane %v2062_v54, %v3068_v33 }
 0x22c   : > { %v2013_v29 = vcombine.low %v1769_v25, %v1810_v26  ;;  %v2014_v57 = vcombine.high %v1769_v25, %v1810_v26  ;;  %v1771_v27 = vpop.f32.mrb[5].mxu0  ;;  %v1812_v6 = vpop.f32.mrb[5].mxu1 }
 0x22d   : > { %v2029_v30 = vcombine.low %v1771_v27, %v1812_v6  ;;  %v2030_v31 = vcombine.high %v1771_v27, %v1812_v6  ;;  %v1773_v28 = vpop.f32.mrb[6].mxu0  ;;  %v1814_v32 = vpop.f32.mrb[6].mxu1 }
 0x22e   : > { %v2021_v34 = vrot.slane %v2013_v29, %v3062_v59  ;;  %v2028_v35 = vrot.slane %v2014_v57, %v3062_v59  ;;  %v1774_v36 = vpop.f32.mrb[7].mxu0  ;;  %v1815_v37 = vpop.f32.mrb[7].mxu1 }
 0x22f   : > { %v2037_v38 = vrot.slane %v2029_v30, %v3062_v59  ;;  %v2044_v39 = vrot.slane %v2030_v31, %v3062_v59 }
 0x231   : > { %v2077_v40 = vcombine.low %v2021_v34, %v2037_v38  ;;  %v2078_v62 = vcombine.high %v2021_v34, %v2037_v38  ;;  %v2093_v11 = vcombine.low %v2028_v35, %v2044_v39  ;;  %v2094_v41 = vcombine.high %v2028_v35, %v2044_v39 }
 0x233   : > { %v3081_v42 = vrot.slane %v2077_v40, %v3068_v33  ;;  %v3084_v43 = vrot.slane %v2078_v62, %v3068_v33  ;;  %v3087_v4 = vrot.slane %v2093_v11, %v3068_v33  ;;  %v3090_v44 = vrot.slane %v2094_v41, %v3068_v33  ;;  %v1851_v45 = vpop.f32.mrb[8].mxu0  ;;  %v1892_v46 = vpop.f32.mrb[8].mxu1 }
 0x234   : > { %v2117_v49 = vcombine.low %v1851_v45, %v1892_v46  ;;  %v2118_v50 = vcombine.high %v1851_v45, %v1892_v46  ;;  %v1853_v51 = vpop.f32.mrb[9].mxu0  ;;  %v1894_v52 = vpop.f32.mrb[9].mxu1 }
 0x235   : > { %v2109_v53 = vcombine.low %v3075_v5, %v3081_v42  ;;  %v2110_v55 = vcombine.high %v3075_v5, %v3081_v42  ;;  %v2111_v56 = vcombine.low %v3078_v18, %v3084_v43  ;;  %v2112_v58 = vcombine.high %v3078_v18, %v3084_v43  ;;  %v1855_v13 = vpop.f32.mrb[10].mxu0  ;;  %v1896_v60 = vpop.f32.mrb[10].mxu1 }
 0x236   : > { %v2113_v61 = vcombine.low %v3093_v47, %v3087_v4  ;;  %v2114_v0 = vcombine.high %v3093_v47, %v3087_v4  ;;  %v2115_v1 = vcombine.low %v3096_v48, %v3090_v44  ;;  %v2116_v2 = vcombine.high %v3096_v48, %v3090_v44  ;;  %v1856_v3 = vpop.f32.mrb[11].mxu0  ;;  %v1897_v7 = vpop.f32.mrb[11].mxu1 }
 0x237   : > { %v2125_v8 = vrot.slane %v2117_v49, %v3062_v59  ;;  %v2132_v9 = vrot.slane %v2118_v50, %v3062_v59  ;;  %v2133_v16 = vcombine.low %v1853_v51, %v1894_v52  ;;  %v2134_v10 = vcombine.high %v1853_v51, %v1894_v52 }
 0x239   : > { %v2141_v12 = vrot.slane %v2133_v16, %v3062_v59  ;;  %v2148_v17 = vrot.slane %v2134_v10, %v3062_v59 }
 0x23b   : > { %v2181_v15 = vcombine.low %v2125_v8, %v2141_v12  ;;  %v2182_v19 = vcombine.high %v2125_v8, %v2141_v12  ;;  %v2197_v20 = vcombine.low %v2132_v9, %v2148_v17  ;;  %v2198_v21 = vcombine.high %v2132_v9, %v2148_v17  ;;  %v1933_v22 = vpop.f32.mrb[12].mxu0  ;;  %v1974_v14 = vpop.f32.mrb[12].mxu1 }
 0x23c   : > { %v2149_v23 = vcombine.low %v1933_v22, %v1974_v14  ;;  %v2150_v24 = vcombine.high %v1933_v22, %v1974_v14  ;;  %v1935_v54 = vpop.f32.mrb[13].mxu0  ;;  %v1976_v63 = vpop.f32.mrb[13].mxu1 }
 0x23d   : > { %v1937_v25 = vpop.f32.mrb[14].mxu0  ;;  %v1978_v26 = vpop.f32.mrb[14].mxu1  ;;  %v2165_v27 = vcombine.low %v1935_v54, %v1976_v63  ;;  %v2166_v6 = vcombine.high %v1935_v54, %v1976_v63  ;;  %v2189_v38 = vrot.slane %v2181_v15, %v3068_v33  ;;  %v2196_v39 = vrot.slane %v2182_v19, %v3068_v33 }
 0x23e   : > { %v2157_v29 = vrot.slane %v2149_v23, %v3062_v59  ;;  %v2164_v57 = vrot.slane %v2150_v24, %v3062_v59  ;;  %v1938_v30 = vpop.f32.mrb[15].mxu0  ;;  %v1979_v31 = vpop.f32.mrb[15].mxu1  ;;  %v2205_v5 = vrot.slane %v2197_v20, %v3068_v33 }
 0x23f   : > { %v2173_v28 = vrot.slane %v2165_v27, %v3062_v59  ;;  %v2180_v32 = vrot.slane %v2166_v6, %v3062_v59  ;;  %v2212_v59 = vrot.slane %v2198_v21, %v3068_v33 }
 0x241   : > { %v2213_v34 = vcombine.low %v2157_v29, %v2173_v28  ;;  %v2214_v35 = vcombine.high %v2157_v29, %v2173_v28  ;;  %v2229_v36 = vcombine.low %v2164_v57, %v2180_v32  ;;  %v2230_v37 = vcombine.high %v2164_v57, %v2180_v32 }
 0x243   : > { %v2221_v40 = vrot.slane %v2213_v34, %v3068_v33  ;;  %v2228_v62 = vrot.slane %v2214_v35, %v3068_v33  ;;  %v2237_v11 = vrot.slane %v2229_v36, %v3068_v33  ;;  %v2244_v41 = vrot.slane %v2230_v37, %v3068_v33 }
 0x245   : > { %v2245_v18 = vcombine.low %v2189_v38, %v2221_v40  ;;  %v2246_v42 = vcombine.high %v2189_v38, %v2221_v40  ;;  %v2247_v43 = vcombine.low %v2196_v39, %v2228_v62  ;;  %v2248_v4 = vcombine.high %v2196_v39, %v2228_v62 }
 0x246   : > { %v2249_v44 = vcombine.low %v2205_v5, %v2237_v11  ;;  %v2250_v45 = vcombine.high %v2205_v5, %v2237_v11  ;;  %v2251_v46 = vcombine.low %v2212_v59, %v2244_v41  ;;  %v2252_v47 = vcombine.high %v2212_v59, %v2244_v41 }
 0x247   : > { %v2606_v48 = vpack.c.bf16 %v2245_v18, %v2109_v53  ;;  %v2611_v49 = vpack.c.bf16 %v2246_v42, %v2110_v55  ;;  %v2616_v50 = vpack.c.bf16 %v2247_v43, %v2111_v56  ;;  %v2621_v33 = vpack.c.bf16 %v2248_v4, %v2112_v58 }
 0x248   : > { %v2626_v51 = vpack.c.bf16 %v2249_v44, %v2113_v61  ;;  %v2631_v52 = vpack.c.bf16 %v2250_v45, %v2114_v0  ;;  %v2636_v13 = vpack.c.bf16 %v2251_v46, %v2115_v1  ;;  %v2641_v60 = vpack.c.bf16 %v2252_v47, %v2116_v2 }
 0x249   : > { %2607 = vst [vmem:[%s2828_s7] sm:$0xff] %v2606_v48   ;;  %2643 = vst [vmem:[%s2828_s7 + $0x8] sm:$0xff] %v2611_v49  }
 0x24a   : > { %2644 = vst [vmem:[%s2828_s7 + $0x10] sm:$0xff] %v2616_v50   ;;  %2645 = vst [vmem:[%s2828_s7 + $0x18] sm:$0xff] %v2621_v33  }
 0x24b   : > { %2646 = vst [vmem:[%s2828_s7 + $0x20] sm:$0xff] %v2626_v51   ;;  %2647 = vst [vmem:[%s2828_s7 + $0x28] sm:$0xff] %v2631_v52  }
 0x24c   : > { %2648 = vst [vmem:[%s2828_s7 + $0x30] sm:$0xff] %v2636_v13   ;;  %2649 = vst [vmem:[%s2828_s7 + $0x38] sm:$0xff] %v2641_v60  }
 0x24d PF: > { %s13_s16 = sadd.s32 1, %s2754_s16   ;;  %s3157_s12 = smov %s2746_s14 }
 0x24e   : > { %p10_p9 = scmp.ge.s32.totalorder %s13_s16, 6   ;;  %s3158_s13 = smov %s2750_s15 }
 0x24f   : > { %s3159_s14 = smov %s3162_s17  ;;  %s3160_s15 = smov %s3166_s18 }
 0x250   :  { %12 = sbr.rel (!%p10_p9) target bundleno = 3 (0x3), region = 72 }

</bundles_post_ra>
